<compile_context>
chip_gen: v7x
topology: tpu7x:2x2x1
jax: 0.10.0
libtpu: 0.0.40
codegen_flags: <defaults>
</compile_context>

<pallas_src>
import functools

import numpy as np
import jax
import jax.numpy as jnp
from jax import lax
from jax.experimental import pallas as pl
from jax.experimental.pallas import tpu as pltpu


# ----------------------------------------------------------------------------
# Pallas kernels: fused (im2col matmul) + bias + (residual) + (ReLU)
# ----------------------------------------------------------------------------
def _conv_bias_act_kernel(x_ref, w_ref, bias_ref, o_ref, *, apply_relu):
    acc = jnp.dot(x_ref[...], w_ref[...], preferred_element_type=jnp.float32)
    y = acc + bias_ref[...]
    if apply_relu:
        y = jnp.maximum(y, 0.0)
    o_ref[...] = y.astype(o_ref.dtype)


def _conv_bias_res_act_kernel(x_ref, w_ref, bias_ref, res_ref, o_ref, *,
                              apply_relu):
    acc = jnp.dot(x_ref[...], w_ref[...], preferred_element_type=jnp.float32)
    y = acc + bias_ref[...] + res_ref[...]
    if apply_relu:
        y = jnp.maximum(y, 0.0)
    o_ref[...] = y.astype(o_ref.dtype)


# ----------------------------------------------------------------------------
# Glue: im2col patch extraction (pad / shift / stride) — pure indexing
# ----------------------------------------------------------------------------
def _round_up(x, m):
    return (x + m - 1) // m * m


def _extract_patches(x_nhwc, ksize, stride):
    """(N, H, W, C) -> (M = N*Ho*Wo, K = ksize*ksize*C) im2col patches."""
    n, h, w, c = x_nhwc.shape
    pad = ksize // 2
    xp = jnp.pad(x_nhwc, ((0, 0), (pad, pad), (pad, pad), (0, 0)))
    ho = (h + 2 * pad - ksize) // stride + 1
    wo = (w + 2 * pad - ksize) // stride + 1
    taps = []
    for kh in range(ksize):
        for kw in range(ksize):
            taps.append(xp[:, kh:kh + stride * ho:stride,
                           kw:kw + stride * wo:stride, :])
    patches = jnp.stack(taps, axis=3)                 # (N, Ho, Wo, KH*KW, C)
    patches = patches.reshape(n * ho * wo, ksize * ksize * c)
    return patches, (n, ho, wo)


def _pick_tile_m(m, tile_m_max):
    """Sublane-friendly tile; try to give >= 2 grid steps (v7x megacore)."""
    m16 = _round_up(m, 16)            # bf16 sublane packing = 16
    if m16 <= 16:
        return m16
    half = _round_up((m16 + 1) // 2, 16)
    return max(16, min(tile_m_max, half))


def conv_bn_act(x_nhwc, w_oihw, scale, bias, *, stride, residual=None,
                apply_relu=True, tile_m_max=512):
    """Conv2d(bias=False, pad=k//2, stride) + folded BN + (residual) + (ReLU)."""
    cout, cin, kh, kw = w_oihw.shape
    patches, (n, ho, wo) = _extract_patches(x_nhwc, kh, stride)
    k = kh * kw * cin
    m = n * ho * wo

    k_pad = _round_up(k, 128)         # MXU/lane-aligned contraction
    cout_pad = _round_up(cout, 128)   # lane-dense output
    tile_m = _pick_tile_m(m, tile_m_max)
    m_pad = _round_up(m, tile_m)

    patches = jnp.pad(patches, ((0, m_pad - m), (0, k_pad - k)))
    patches = patches.astype(jnp.bfloat16)

    # (Cout, Cin, KH, KW) -> (KH, KW, Cin, Cout) -> (K, Cout); fold BN scale.
    w_mat = jnp.transpose(w_oihw, (2, 3, 1, 0)).reshape(k, cout)
    w_mat = w_mat * scale.reshape(1, cout).astype(w_mat.dtype)
    w_mat = jnp.pad(w_mat, ((0, k_pad - k), (0, cout_pad - cout)))
    w_mat = w_mat.astype(jnp.bfloat16)

    bias2 = jnp.pad(bias.reshape(1, cout).astype(jnp.float32),
                    ((0, 0), (0, cout_pad - cout)))

    in_specs = [
        pl.BlockSpec((tile_m, k_pad), lambda i: (i, 0)),
        pl.BlockSpec((k_pad, cout_pad), lambda i: (0, 0)),
        pl.BlockSpec((1, cout_pad), lambda i: (0, 0)),
    ]
    args = [patches, w_mat, bias2]

    if residual is not None:
        res = jnp.pad(residual.reshape(m, cout).astype(jnp.float32),
                      ((0, m_pad - m), (0, cout_pad - cout)))
        in_specs.append(pl.BlockSpec((tile_m, cout_pad), lambda i: (i, 0)))
        args.append(res)
        kernel = functools.partial(_conv_bias_res_act_kernel,
                                   apply_relu=apply_relu)
    else:
        kernel = functools.partial(_conv_bias_act_kernel,
                                   apply_relu=apply_relu)

    out = pl.pallas_call(
        kernel,
        out_shape=jax.ShapeDtypeStruct((m_pad, cout_pad), jnp.float32),
        grid_spec=pltpu.PrefetchScalarGridSpec(
            num_scalar_prefetch=0,
            grid=(m_pad // tile_m,),
            in_specs=in_specs,
            out_specs=pl.BlockSpec((tile_m, cout_pad), lambda i: (i, 0)),
        ),
        compiler_params=pltpu.CompilerParams(
            dimension_semantics=("parallel",),
            vmem_limit_bytes=48 * 1024 * 1024,
        ),
    )(*args)
    return out[:m, :cout].reshape(n, ho, wo, cout)


# ----------------------------------------------------------------------------
# Parameters (deterministic, synthetic) and BN folding
# ----------------------------------------------------------------------------
def _fold_bn(gamma, beta, mean, var, eps=1e-5):
    scale = gamma / jnp.sqrt(var + eps)
    return scale, beta - mean * scale


def _init_bn(keys, c):
    gamma = 1.0 + 0.1 * jax.random.normal(keys[0], (c,), jnp.float32)
    beta = 0.1 * jax.random.normal(keys[1], (c,), jnp.float32)
    mean = 0.1 * jax.random.normal(keys[2], (c,), jnp.float32)
    var = 1.0 + 0.1 * jax.random.uniform(keys[3], (c,), jnp.float32)
    return gamma, beta, mean, var


def _init_conv(key, cout, cin, kh, kw):
    fan_in = cin * kh * kw
    return jax.random.normal(key, (cout, cin, kh, kw), jnp.float32) * jnp.sqrt(
        2.0 / fan_in)


def init_block_params(key, cin, cout):
    ks = jax.random.split(key, 15)
    p = {
        "w1": _init_conv(ks[0], cout, cin, 3, 3),
        "bn1": _init_bn(ks[1:5], cout),
        "w2": _init_conv(ks[5], cout, cout, 3, 3),
        "bn2": _init_bn(ks[6:10], cout),
    }
    if cin != cout:  # expansion = 1
        p["w_s"] = _init_conv(ks[10], cout, cin, 1, 1)
        p["bn_s"] = _init_bn(ks[11:15], cout)
    return p


# ----------------------------------------------------------------------------
# ResNetBasicBlock / ResNetLayer forward (Pallas-backed)
# ----------------------------------------------------------------------------
def resnet_basic_block(x_nhwc, p, downsampling):
    cin = x_nhwc.shape[-1]
    cout = p["w1"].shape[0]
    if cin != cout:  # should_apply_shortcut (expansion = 1)
        s_s, b_s = _fold_bn(*p["bn_s"])
        residual = conv_bn_act(x_nhwc, p["w_s"], s_s, b_s,
                               stride=downsampling, apply_relu=False)
    else:
        # Matches the reference PyTorch module (shortcut only when channels
        # differ); identity residual assumes downsampling == 1 here.
        residual = x_nhwc
    s1, b1 = _fold_bn(*p["bn1"])
    y = conv_bn_act(x_nhwc, p["w1"], s1, b1,
                    stride=downsampling, apply_relu=True)
    s2, b2 = _fold_bn(*p["bn2"])
    out = conv_bn_act(y, p["w2"], s2, b2, stride=1,
                      residual=residual, apply_relu=True)
    return out


def resnet_layer(x_nchw, block_params, downsampling):
    x = jnp.transpose(x_nchw, (0, 2, 3, 1))  # NCHW -> NHWC
    for i, p in enumerate(block_params):
        d = downsampling if i == 0 else 1
        x = resnet_basic_block(x, p, d)
    return jnp.transpose(x, (0, 3, 1, 2))    # NHWC -> NCHW


# ----------------------------------------------------------------------------
# Pure-JAX reference (for correctness check)
# ----------------------------------------------------------------------------
def _ref_conv(x_nhwc, w_oihw, stride):
    pad = w_oihw.shape[2] // 2
    return lax.conv_general_dilated(
        x_nhwc, jnp.transpose(w_oihw, (2, 3, 1, 0)),
        (stride, stride), [(pad, pad), (pad, pad)],
        dimension_numbers=("NHWC", "HWIO", "NHWC"),
        precision=lax.Precision.HIGHEST)


def _ref_block(x, p, d):
    cin, cout = x.shape[-1], p["w1"].shape[0]
    if cin != cout:
        s_s, b_s = _fold_bn(*p["bn_s"])
        residual = _ref_conv(x, p["w_s"], d) * s_s + b_s
    else:
        residual = x
    s1, b1 = _fold_bn(*p["bn1"])
    y = jnp.maximum(_ref_conv(x, p["w1"], d) * s1 + b1, 0.0)
    s2, b2 = _fold_bn(*p["bn2"])
    return jnp.maximum(_ref_conv(y, p["w2"], 1) * s2 + b2 + residual, 0.0)


def _ref_layer(x_nchw, block_params, downsampling):
    x = jnp.transpose(x_nchw, (0, 2, 3, 1))
    for i, p in enumerate(block_params):
        x = _ref_block(x, p, downsampling if i == 0 else 1)
    return jnp.transpose(x, (0, 3, 1, 2))


# ----------------------------------------------------------------------------
if __name__ == "__main__":
    key = jax.random.PRNGKey(0)
    kx, kp = jax.random.split(key)

    # ResNetLayer(in_channels=4, out_channels=8, n=1) -> downsampling = 2
    N, Cin, H, W = 2, 4, 16, 16
    Cout = 8
    x = jax.random.normal(kx, (N, Cin, H, W), jnp.float32)
    params = [init_block_params(kp, Cin, Cout)]

    out = resnet_layer(x, params, downsampling=2)
    out = jax.block_until_ready(out)

    assert out.shape == (N, Cout, H // 2, W // 2), out.shape
    ref = jax.block_until_ready(_ref_layer(x, params, 2))
    np.testing.assert_allclose(np.asarray(out), np.asarray(ref),
                               atol=5e-2, rtol=5e-2)
    print("KERNEL_OK")
</pallas_src>

<mosaic_0001>
module attributes {stable_mosaic.version = 11 : i64} {
  func.func @_conv_bias_act_kernel(%arg0: i32, %arg1: memref<64x128xbf16, #tpu.memory_space<vmem>>, %arg2: memref<128x128xbf16, #tpu.memory_space<vmem>>, %arg3: memref<1x128xf32, #tpu.memory_space<vmem>>, %arg4: memref<64x128xf32, #tpu.memory_space<vmem>>) attributes {dimension_semantics = [#tpu.dimension_semantics<parallel>], iteration_bounds = array<i64: 2>, scalar_prefetch = 0 : i64, scratch_operands = 0 : i64, tpu.core_type = #tpu.core_type<tc>, window_params = [{transform_indices = @transform_0, window_bounds = array<i64: 64, 128>}, {pipeline_mode = #tpu.pipeline_mode<synchronous>, transform_indices = @transform_1, window_bounds = array<i64: 128, 128>}, {pipeline_mode = #tpu.pipeline_mode<synchronous>, transform_indices = @transform_2, window_bounds = array<i64: 1, 128>}, {transform_indices = @transform_3, window_bounds = array<i64: 64, 128>}]} {
    %c0 = arith.constant 0 : index
    %c0_0 = arith.constant 0 : index
    %0 = vector.load %arg1[%c0, %c0_0] : memref<64x128xbf16, #tpu.memory_space<vmem>>, vector<64x128xbf16>
    %c0_1 = arith.constant 0 : index
    %c0_2 = arith.constant 0 : index
    %1 = vector.load %arg2[%c0_1, %c0_2] : memref<128x128xbf16, #tpu.memory_space<vmem>>, vector<128x128xbf16>
    %cst = arith.constant dense<0.000000e+00> : vector<64x128xf32>
    %2 = tpu.matmul %0, %1, %cst {dimension_numbers = #tpu.dot_dimension_numbers<[1], [0], [0], [1], [0, 0, 1, 1], [], []>} : vector<64x128xbf16>, vector<128x128xbf16>, vector<64x128xf32> -> vector<64x128xf32>
    %c0_3 = arith.constant 0 : index
    %c0_4 = arith.constant 0 : index
    %3 = vector.load %arg3[%c0_3, %c0_4] : memref<1x128xf32, #tpu.memory_space<vmem>>, vector<1x128xf32>
    %4 = vector.broadcast %3 : vector<1x128xf32> to vector<64x128xf32>
    %5 = arith.addf %2, %4 : vector<64x128xf32>
    %c0_5 = arith.constant 0 : index
    %c0_6 = arith.constant 0 : index
    %6 = vector.load %arg4[%c0_5, %c0_6] : memref<64x128xf32, #tpu.memory_space<vmem>>, vector<64x128xf32>
    tpu.vector_store %arg4[%c0_5, %c0_6], %5 {strides = array<i32>} : memref<64x128xf32, #tpu.memory_space<vmem>>, vector<64x128xf32>,
    return
  }
  func.func @transform_0(%arg0: i32) -> (i32, i32) {
    %c0_i32 = arith.constant 0 : i32
    %c0_i32_0 = arith.constant 0 : i32
    return %arg0, %c0_i32 : i32, i32
  }
  func.func @transform_1(%arg0: i32) -> (i32, i32) {
    %c0_i32 = arith.constant 0 : i32
    %c0_i32_0 = arith.constant 0 : i32
    %c0_i32_1 = arith.constant 0 : i32
    return %c0_i32, %c0_i32_0 : i32, i32
  }
  func.func @transform_2(%arg0: i32) -> (i32, i32) {
    %c0_i32 = arith.constant 0 : i32
    %c0_i32_0 = arith.constant 0 : i32
    %c0_i32_1 = arith.constant 0 : i32
    return %c0_i32, %c0_i32_0 : i32, i32
  }
  func.func @transform_3(%arg0: i32) -> (i32, i32) {
    %c0_i32 = arith.constant 0 : i32
    %c0_i32_0 = arith.constant 0 : i32
    return %arg0, %c0_i32 : i32, i32
  }
}

</mosaic_0001>

<bundles_post_ra>
// kernel: tpu_custom_call.1
= control target key start
LH: loop header
LB: loop body
LE: loop exit
PB: predicated region body
PF: predicated region fallthrough
CT: control target
= control target key end

     0   :  { %8 = vsyncpa [#allocation3], 0  ;;  %s1010_s0 = inlined_call_operand.hbm [shape: bf16[128,128], index: 0, kind: input, shape index: {}]   ;;  %s1011_s1 = inlined_call_operand.hbm [shape: bf16[128,128], index: 1, kind: input, shape index: {}]   ;;  %s1012_s2 = inlined_call_operand.vmem [shape: f32[1,128], index: 2, kind: input, shape index: {}]   ;;  %s1013_s3 = inlined_call_operand.hbm [shape: f32[128,128], index: 3, kind: output, shape index: {}]  }
   0x1   :  { %10 = vsyncpa [#allocation3 + $0x1], 0 }
   0x2   :  { %11 = vsyncpa [#allocation6], 0 }
   0x3   :  { %12 = vsyncpa [#allocation4], 0 }
   0x4   :  { %14 = vsyncpa [#allocation4 + $0x1], 0  ;;  %s793_s12 = smov 0   ;;  %s795_s13 = smov 0  }
   0x5   :  { %s797_s14 = smov 0   ;;  %s799_s15 = smov 0  }
   0x6 LB: > { %s814_s16 = sadd.s32 4294967295, %s764_s15   ;;  %s480_s17 = sadd.s32 4294967294, %s764_s15   ;;  %s764_s15 = sphi %s799_s15, %s1033_s15   ;;  %s760_s14 = sphi %s797_s14, %s1032_s14   ;;  %s756_s13 = sphi %s795_s13, %s1031_s13   ;;  %s752_s12 = sphi %s793_s12, %s1030_s12  }
   0x7   : > { %p40_p0 = scmp.ne.s32.totalorder %s756_s13, %s752_s12  ;;  %p1014_p1 = scmp.eq.s32.totalorder %s814_s16, 0 }
   0x8   : > { %p112_p3 = scmp.eq.s32.totalorder %s480_s17, 1  ;;  %p481_p5 = scmp.ge.s32.totalorder %s764_s15, 1 }
   0x9   : > { %p823_p4 = por %p1014_p1, %p40_p0  ;;  %p119_p7 = scmp.lt.s32.totalorder %s764_s15, 3 }
   0xa   : > { %p828_p6 = por %p112_p3, %p40_p0  ;;  %s766_s21 = smov [#allocation5]  }
   0xb   : > { %s1017_s18 = scalar_select %p823_p4, 1, 0 }
   0xc   : > { %s1018_s19 = scalar_select %p828_p6, 1, 0 }
   0xd   : > { %p833_p8 = pnand %p481_p5, %p119_p7  ;;  %s131_s22 = sshll.u32 %s766_s21, 4  ;;  %s837_s22 = int_to_ptr.vmem [resolvable:$true] %s131_s22 }
   0xe   : > { %s849_s24 = sadd.s32 1, %s764_s15   ;;  %s27_s25 = sadd.s32 1, %s760_s14 }
   0xf   : > { %s1019_s20 = scalar_select %p833_p8, 1, 0 }
  0x10   : > { %p571_p9 = pneg %p833_p8  ;;  %s24_s26 = ssub.s32 %s764_s15, %s849_s24 }
  0x11   : > { %s636_s29 = scalar_lea.hbm %s1011_s1, 1024 }
  0x12   : > { %p844_p11 = pnand %p571_p9, %p1014_p1  ;;  %p637_p12 = scmp.ne.s32.totalorder %s1011_s1, %s636_s29 }
  0x13   : > { %p643_p5 = scmp.lt.u32.totalorder %s636_s29, %s1011_s1 }
  0x14   : > { %p638_p13 = pneg %p844_p11 }
  0x16   : > { %p639_p0 = pnand %p638_p13, %p637_p12 }
  0x18   : > { %p640_p3 = pneg %p639_p0 }
  0x1a   : > { %p645_p7 = pnand %p643_p5, %p640_p3 }
  0x1c   : > { %648 = shalt.err (!%p645_p7)
}
  0x1d   : > { %s649_s7 = scalar_lea.vmem %s837_s22, 1024  ;;  %p657_p2 = scmp.lt.s32.totalorder %s837_s22, %s837_s22 }
  0x1e   : > { %p650_p9 = scmp.ne.s32.totalorder %s837_s22, %s649_s7  ;;  %p658_p6 = scmp.lt.s32.totalorder %s649_s7, %s649_s7 }
  0x20   : > { %p652_p10 = pnand %p650_p9, %p638_p13  ;;  %p659_p4 = por %p658_p6, %p657_p2 }
  0x22   : > { %p653_p1 = pneg %p652_p10 }
  0x24   : > { %p660_p8 = pnand %p659_p4, %p653_p1 }
  0x26   : > { %663 = shalt.err (!%p660_p8)
}
  0x27   : > { %s767_s8 = smov 64   ;;  %s768_s9 = smov 4  }
  0x28   : > { %574 = dma.hbm_to_vmem [thread:$0]  (!%p844_p11), %s1011_s1, 1024, %s837_s22, [#allocation6], %s767_s8, %s767_s8, %s768_s9  }
  0x29   : > { %p25_p1 = scmp.eq.s32.totalorder %s24_s26, 0  ;;  %p34_p2 = scmp.ne.s32.totalorder %s760_s14, %s756_s13 }
  0x2a   : > { %p35_p4 = scmp.eq.s32.totalorder %s764_s15, 0  ;;  %p584_p6 = scmp.lt.s32.totalorder %s764_s15, 2 }
  0x2b   : > { %s883_s17 = scalar_select %p25_p1, %s760_s14, %s27_s25  }
  0x2c   : > { %p36_p8 = por %p35_p4, %p34_p2  ;;  %p1021_p10 = scmp.eq.s32.totalorder %s814_s16, 1 }
  0x2d   : > { %s148_s23 = sand.u32 1, %s760_s14   ;;  %s509_s27 = sshll.u32 %s764_s15, 9 }
  0x2e   : > { %p887_p12 = por %p1021_p10, %p34_p2  ;;  %s484_s28 = sshll.u32 %s148_s23, 5 }
  0x2f   : > { %s896_s4 = scalar_lea.hbm %s1010_s0, %s509_s27  ;;  %s152_s22 = scalar_lea.vmem [#allocation2], %s484_s28 }
  0x30   : > { %s159_s25 = sshll.u32 %s152_s22, 4  ;;  %p898_p11 = pnand %p584_p6, %p36_p8  ;;  %s902_s25 = int_to_ptr.vmem [resolvable:$true] %s159_s25 }
  0x31   : > { %s904_s5 = scalar_lea.sflag [#allocation3], %s148_s23  ;;  %s664_s6 = scalar_lea.hbm %s896_s4, 512 }
  0x32   : > { %p665_p13 = scmp.ne.s32.totalorder %s896_s4, %s664_s6  ;;  %p666_p0 = pneg %p898_p11 }
  0x33   : > { %s669_s11 = scalar_lea.hbm %s1010_s0, 1024  ;;  %p670_p7 = scmp.lt.u32.totalorder %s896_s4, %s1010_s0 }
  0x34   : > { %p667_p3 = pnand %p666_p0, %p665_p13  ;;  %p671_p9 = scmp.lt.u32.totalorder %s669_s11, %s664_s6 }
  0x35   : > { %p673_p2 = scmp.lt.u32.totalorder %s664_s6, %s896_s4 }
  0x36   : > { %p668_p5 = pneg %p667_p3  ;;  %p672_p1 = por %p671_p9, %p670_p7 }
  0x38   : > { %p674_p4 = por %p673_p2, %p672_p1 }
  0x3a   : > { %p675_p6 = pnand %p674_p4, %p668_p5 }
  0x3c   : > { %678 = shalt.err (!%p675_p6)
}
  0x3d   : > { %s679_s23 = scalar_lea.vmem %s902_s25, 512  ;;  %s769_s29 = smov [#allocation2]  }
  0x3e   : > { %p680_p8 = scmp.ne.s32.totalorder %s902_s25, %s679_s23  ;;  %s684_s30 = sshll.u32 %s769_s29, 4  ;;  %s685_s30 = int_to_ptr.vmem [resolvable:$false] %s684_s30 }
  0x3f   : > { %s686_s22 = scalar_lea.vmem %s685_s30, 1024  ;;  %p687_p3 = scmp.lt.s32.totalorder %s902_s25, %s685_s30 }
  0x40   : > { %p682_p10 = pnand %p680_p8, %p666_p0  ;;  %p688_p7 = scmp.lt.s32.totalorder %s686_s22, %s679_s23 }
  0x42   : > { %p683_p13 = pneg %p682_p10  ;;  %p689_p9 = por %p688_p7, %p687_p3 }
  0x44   : > { %p690_p1 = pnand %p689_p9, %p683_p13 }
  0x46   : > { %693 = shalt.err (!%p690_p1)
}
  0x47   : > { %578 = dma.hbm_to_vmem [thread:$0]  (!%p898_p11), %s896_s4, 512, %s902_s25, %s904_s5, %s767_s8, %s767_s8, %s768_s9  }
  0x48   : > { %p1024_p0 = scmp.ne.s32.totalorder %s1019_s20, 0 }
  0x49   : > { %s938_s6 = sand.u32 (!%p1024_p0), 1, %s756_s13   ;;  %p1025_p5 = scmp.ne.s32.totalorder (!%p1024_p0), %s1017_s18, 0 }
  0x4a   : > { %171 = sbr.rel (%p1024_p0) target bundleno = 350 (0x15e), region = 32  ;;  %s488_s7 = sshll.u32 (!%p1024_p0), %s938_s6, 5 }
  0x4b   : > { %s174_s10 = scalar_lea.sflag (!%p1024_p0), [#allocation3], %s938_s6  ;;  %s942_s11 = scalar_lea.vmem (!%p1024_p0), [#allocation2], %s488_s7 }
  0x51   : > { %739 = dma.done.wait (%p1025_p5), %s174_s10, 512  }
  0x52   : > { %741 = vsyncadd (%p1025_p5), %s174_s10, 4294966784  ;;  %p1026_p11 = scmp.eq.s32.totalorder %s814_s16, 0 }
  0x54   : > { %743 = dma.done.wait (%p1026_p11), [#allocation6], 1024   ;;  %p1027_p2 = pmov %p1026_p11 }
  0x55   : > { %v624_v0 = vld [vmem:[#allocation5] sm:$0xff]   ;;  %v625_v1 = vld [vmem:[#allocation5 + $0x8] sm:$0xff]   ;;  %v626_v2 = vld [vmem:[#allocation5 + $0x10] sm:$0xff]   ;;  %s490_s18 = sshll.u32 %s938_s6, 6  ;;  %s510_s25 = sshll.u32 %s814_s16, 10 }
  0x56   : > { %745 = vsyncadd (%p1027_p2), [#allocation6], 4294966272  ;;  %523 = vmatprep.subr.bf16.mxu0 %v624_v0  ;;  %547 = vmatprep.subr.bf16.mxu1 %v624_v0  ;;  %v627_v3 = vld [vmem:[#allocation5 + $0x18] sm:$0xff]   ;;  %v632_v4 = vld [vmem:[%s942_s11] sm:$0xff]   ;;  %s203_s9 = scalar_lea.vmem [#allocation7], %s490_s18  ;;  %s966_s5 = scalar_lea.hbm %s1013_s3, %s510_s25 }
  0x57   : > { %524 = vmatpush3.bf16.msra.mxu0 %v624_v0  ;;  %555 = vmatpush3.bf16.msra.mxu1 %v624_v0  ;;  %v633_v5 = vld [vmem:[%s942_s11 + $0x10] sm:$0xff]   ;;  %v628_v6 = vld [vmem:[#allocation5 + $0x20] sm:$0xff]   ;;  %v629_v7 = vld [vmem:[#allocation5 + $0x28] sm:$0xff]   ;;  %s397_s4 = sshll.u32 %s203_s9, 4  ;;  %s384_s27 = scalar_lea.sflag [#allocation4], %s938_s6  ;;  %s961_s4 = int_to_ptr.vmem [resolvable:$true] %s397_s4 }
  0x58   : > { %525 = vmatprep.subr.bf16.mxu0 %v625_v1  ;;  %548 = vmatprep.subr.bf16.mxu1 %v625_v1  ;;  %v630_v8 = vld [vmem:[#allocation5 + $0x30] sm:$0xff]   ;;  %v631_v9 = vld [vmem:[#allocation5 + $0x38] sm:$0xff]   ;;  %v634_v10 = vld [vmem:[%s942_s11 + $0x8] sm:$0xff]   ;;  %s694_s28 = scalar_lea.vmem %s961_s4, 1024  ;;  %s770_s23 = smov [#allocation7]  }
  0x59   : > { %539 = vmatprep.mubr.bf16.mxu0 %v632_v4  ;;  %543 = vmatprep.mubr.bf16.mxu1 %v633_v5  ;;  %v635_v11 = vld [vmem:[%s942_s11 + $0x18] sm:$0xff]   ;;  %v491_v12 = vld [vmem:[%s1012_s2] ss:$0 sm:$0xff]  ;;  %p695_p4 = scmp.ne.s32.totalorder %s961_s4, %s694_s28  ;;  %s698_s29 = sshll.u32 %s770_s23, 4  ;;  %s699_s29 = int_to_ptr.vmem [resolvable:$false] %s698_s29 }
  0x5a   : > { %s700_s30 = scalar_lea.vmem %s699_s29, 2048  ;;  %p701_p10 = scmp.lt.s32.totalorder %s961_s4, %s699_s29 }
  0x5b   : > { %526 = vmatpush3.bf16.msra.mxu0 %v625_v1  ;;  %556 = vmatpush3.bf16.msra.mxu1 %v625_v1  ;;  %p696_p6 = pnand %p695_p4, %p887_p12  ;;  %p702_p13 = scmp.lt.s32.totalorder %s700_s30, %s694_s28 }
  0x5c   : > { %527 = vmatprep.subr.bf16.mxu0 %v626_v2  ;;  %549 = vmatprep.subr.bf16.mxu1 %v626_v2 }
  0x5d   : > { %p697_p8 = pneg %p696_p6  ;;  %p703_p3 = por %p702_p13, %p701_p10 }
  0x5f   : > { %528 = vmatpush3.bf16.msra.mxu0 %v626_v2  ;;  %557 = vmatpush3.bf16.msra.mxu1 %v626_v2  ;;  %p704_p7 = pnand %p703_p3, %p697_p8 }
  0x60   : > { %529 = vmatprep.subr.bf16.mxu0 %v627_v3  ;;  %550 = vmatprep.subr.bf16.mxu1 %v627_v3 }
  0x63   : > { %530 = vmatpush3.bf16.msra.mxu0 %v627_v3  ;;  %558 = vmatpush3.bf16.msra.mxu1 %v627_v3 }
  0x64   : > { %531 = vmatprep.subr.bf16.mxu0 %v628_v6  ;;  %551 = vmatprep.subr.bf16.mxu1 %v628_v6 }
  0x67   : > { %532 = vmatpush3.bf16.msra.mxu0 %v628_v6  ;;  %559 = vmatpush3.bf16.msra.mxu1 %v628_v6 }
  0x68   : > { %533 = vmatprep.subr.bf16.mxu0 %v629_v7  ;;  %552 = vmatprep.subr.bf16.mxu1 %v629_v7 }
  0x6b   : > { %534 = vmatpush3.bf16.msra.mxu0 %v629_v7  ;;  %560 = vmatpush3.bf16.msra.mxu1 %v629_v7 }
  0x6c   : > { %535 = vmatprep.subr.bf16.mxu0 %v630_v8  ;;  %553 = vmatprep.subr.bf16.mxu1 %v630_v8 }
  0x6f   : > { %536 = vmatpush3.bf16.msra.mxu0 %v630_v8  ;;  %561 = vmatpush3.bf16.msra.mxu1 %v630_v8 }
  0x70   : > { %537 = vmatprep.subr.bf16.mxu0 %v631_v9  ;;  %554 = vmatprep.subr.bf16.mxu1 %v631_v9 }
  0x73   : > { %538 = vmatpush3.bf16.msra.mxu0 %v631_v9  ;;  %562 = vmatpush3.bf16.msra.mxu1 %v631_v9 }
  0x76   : > { %540 = vmatmul.mubr.bf16.vlgmr.msra.gmra.mrb[0].mxu0 %v634_v10  ;;  %544 = vmatmul.mubr.bf16.vlgmr.msra.gmra.mrb[0].mxu1 %v635_v11 }
 0x149   : > { %v541_v13 = vpop.f32.mrb[0].mxu0  ;;  %v545_v14 = vpop.f32.mrb[0].mxu1 }
 0x14a   : > { %v353_v15 = vadd.f32 %v541_v13, %v491_v12  ;;  %v369_v16 = vadd.f32 %v545_v14, %v491_v12  ;;  %v344_v17 = vpop.f32.mrb[1].mxu0  ;;  %v360_v18 = vpop.f32.mrb[1].mxu1 }
 0x14b   : > { %v345_v19 = vadd.f32 %v491_v12, %v344_v17  ;;  %v361_v20 = vadd.f32 %v491_v12, %v360_v18  ;;  %v542_v21 = vpop.f32.mrb[2].mxu0  ;;  %v546_v22 = vpop.f32.mrb[2].mxu1 }
 0x14c   : > { %377 = vst [vmem:[%s203_s9 + $0x10] sm:$0xff] %v353_v15  ;;  %381 = vst [vmem:[%s203_s9 + $0x30] sm:$0xff] %v369_v16  ;;  %v356_v23 = vadd.f32 %v542_v21, %v491_v12  ;;  %v372_v24 = vadd.f32 %v546_v22, %v491_v12  ;;  %v347_v25 = vpop.f32.mrb[3].mxu0  ;;  %v363_v26 = vpop.f32.mrb[3].mxu1 }
 0x14d   : > { %375 = vst [vmem:[%s203_s9] sm:$0xff] %v345_v19  ;;  %379 = vst [vmem:[%s203_s9 + $0x20] sm:$0xff] %v361_v20  ;;  %v348_v27 = vadd.f32 %v491_v12, %v347_v25  ;;  %v364_v28 = vadd.f32 %v491_v12, %v363_v26 }
 0x14e   : > { %378 = vst [vmem:[%s203_s9 + $0x18] sm:$0xff] %v356_v23  ;;  %382 = vst [vmem:[%s203_s9 + $0x38] sm:$0xff] %v372_v24 }
 0x14f   : > { %376 = vst [vmem:[%s203_s9 + $0x8] sm:$0xff] %v348_v27  ;;  %380 = vst [vmem:[%s203_s9 + $0x28] sm:$0xff] %v364_v28 }
 0x150   : > { %707 = shalt.err (!%p704_p7)
}
 0x151   : > { %s708_s22 = scalar_lea.hbm %s966_s5, 1024  ;;  %s712_s11 = scalar_lea.hbm %s1013_s3, 2048 }
 0x152   : > { %p709_p9 = scmp.ne.s32.totalorder %s966_s5, %s708_s22  ;;  %p713_p5 = scmp.lt.u32.totalorder %s966_s5, %s1013_s3 }
 0x153   : > { %p714_p11 = scmp.lt.u32.totalorder %s712_s11, %s708_s22  ;;  %p716_p4 = scmp.lt.u32.totalorder %s708_s22, %s966_s5 }
 0x154   : > { %p710_p1 = pnand %p709_p9, %p887_p12 }
 0x155   : > { %p715_p2 = por %p714_p11, %p713_p5 }
 0x156   : > { %p711_p0 = pneg %p710_p1 }
 0x157   : > { %p717_p6 = por %p716_p4, %p715_p2 }
 0x159   : > { %p718_p8 = pnand %p717_p6, %p711_p0 }
 0x15b   : > { %721 = shalt.err (!%p718_p8)
}
 0x15c   : > { %s771_s8 = smov 128   ;;  %s772_s9 = smov 8  }
 0x15d   : > { %569 = dma.vmem_to_hbm [thread:$0]  (%p887_p12), %s961_s4, 1024, %s966_s5, %s384_s27, %s771_s8, %s771_s8, %s772_s9  }
 0x15e PF: > { %s412_s25 = sand.u32 1, %s752_s12   ;;  %p1028_p10 = scmp.ne.s32.totalorder %s1018_s19, 0 }
 0x15f   : > { %p1029_p13 = scmp.ge.s32.totalorder %s764_s15, 2  ;;  %s413_s16 = scalar_lea.sflag [#allocation4], %s412_s25 }
 0x161   : > { %p580_p3 = pnand %p1029_p13, %p1028_p10 }
 0x163   : > { %747 = dma.done.wait (!%p580_p3), %s413_s16, 1024  }
 0x164   : > { %749 = vsyncadd (!%p580_p3), %s413_s16, 4294966272  ;;  %p17_p7 = scmp.ge.s32.totalorder %s849_s24, 4   ;;  %s1030_s12 = smov %s756_s13 }
 0x165   : > { %s1031_s13 = smov %s760_s14  ;;  %s1032_s14 = smov %s883_s17 }
 0x166   : > { %s1033_s15 = smov %s849_s24  ;;  %19 = sbr.rel (!%p17_p7) target bundleno = 6 (0x6), region = 81 }
 0x16d   :  { %418 = vsyncpa [#allocation3], 1 }
 0x16e   :  { %420 = vsyncpa [#allocation3 + $0x1], 1 }
 0x16f   :  { %421 = vsyncpa [#allocation6], 1 }
 0x170   :  { %422 = vsyncpa [#allocation4], 1 }
 0x171   :  { %424 = vsyncpa [#allocation4 + $0x1], 1 }

</bundles_post_ra>
